<compile_context>
chip_gen: v7x
topology: tpu7x:2x2x1
jax: 0.10.0
libtpu: 0.0.40
codegen_flags: <defaults>
</compile_context>

<pallas_src>
import functools

import jax
import jax.numpy as jnp
from jax import lax
from jax.experimental import pallas as pl
from jax.experimental.pallas import tpu as pltpu

H1 = 120          # logical hidden-1 width (PyTorch spec)
H2 = 32           # logical hidden-2 width (PyTorch spec)
H1_PAD = 128      # lane-dense padded hidden-1 width
H2_PAD = 128      # lane-dense padded hidden-2 width
OUT_PAD = 128     # lane-dense padded output width


def _mlp_kernel(x_ref, w1_ref, b1_ref, w2_ref, b2_ref, w3_ref, b3_ref, o_ref,
                *, out_size):
    x = x_ref[...]

    # Linear1 + ReLU.  H1 padded 120->128: padded cols of w1/b1 are zero,
    # ReLU(0)=0 and the matching rows of w2 are zero => exact.
    h1 = jnp.dot(x, w1_ref[...], preferred_element_type=jnp.float32) + b1_ref[...]
    h1 = jnp.maximum(h1, 0.0)

    # Linear2 + sigmoid.  H2 padded 32->128: padded lanes become sigmoid(0)=0.5
    # but the matching rows of w3 are zero => exact.
    h2 = jnp.dot(h1, w2_ref[...], preferred_element_type=jnp.float32) + b2_ref[...]
    sig = jax.nn.sigmoid(h2)

    # Output linear (padded to 128 lanes; padded cols of w3/b3 are zero).
    logits = jnp.dot(sig, w3_ref[...], preferred_element_type=jnp.float32) + b3_ref[...]

    # Mask padded lanes to -inf so they contribute nothing to the softmax.
    lane = lax.broadcasted_iota(jnp.int32, logits.shape, 1)
    logits = jnp.where(lane < out_size, logits, -jnp.inf)

    # Numerically stable softmax over the last axis (exact division; the
    # test tolerance of 1e-5 is tighter than pl.reciprocal(approx=True)).
    m = jnp.max(logits, axis=-1, keepdims=True)
    e = jnp.exp(logits - m)
    o_ref[...] = e / jnp.sum(e, axis=-1, keepdims=True)


def neuralnet_forward(x, w1, b1, w2, b2, w3, b3):
    """x: (N, in_size); w1: (in,120), b1: (1,120); w2: (120,32), b2: (1,32);
    w3: (32,out), b3: (1,out).  Returns softmax probs (N, out)."""
    n, in_size = x.shape
    out_size = w3.shape[1]

    # ---- exact lane-dense zero-padding of parameters ----
    w1p = jnp.pad(w1, ((0, 0), (0, H1_PAD - H1)))
    b1p = jnp.pad(b1.reshape(1, H1), ((0, 0), (0, H1_PAD - H1)))
    w2p = jnp.pad(w2, ((0, H1_PAD - H1), (0, H2_PAD - H2)))
    b2p = jnp.pad(b2.reshape(1, H2), ((0, 0), (0, H2_PAD - H2)))
    w3p = jnp.pad(w3, ((0, H2_PAD - H2), (0, OUT_PAD - out_size)))
    b3p = jnp.pad(b3.reshape(1, out_size), ((0, 0), (0, OUT_PAD - out_size)))

    # ---- batch tiling: grid over N, weights stay resident across steps ----
    tile_n = 256 if n >= 256 else max(8, ((n + 7) // 8) * 8)
    n_pad = ((n + tile_n - 1) // tile_n) * tile_n
    xp = jnp.pad(x, ((0, n_pad - n), (0, 0))) if n_pad != n else x
    grid = (n_pad // tile_n,)

    def wspec(shape):
        return pl.BlockSpec(shape, lambda i: (0, 0))   # weights: resident block

    flops = 2 * n_pad * (in_size * H1_PAD + H1_PAD * H2_PAD + H2_PAD * OUT_PAD)
    transcendentals = n_pad * (H2_PAD + OUT_PAD)        # sigmoid + softmax exp
    bytes_accessed = 4 * (n_pad * in_size + n_pad * OUT_PAD
                          + in_size * H1_PAD + H1_PAD
                          + H1_PAD * H2_PAD + H2_PAD
                          + H2_PAD * OUT_PAD + OUT_PAD)

    out = pl.pallas_call(
        functools.partial(_mlp_kernel, out_size=out_size),
        out_shape=jax.ShapeDtypeStruct((n_pad, OUT_PAD), jnp.float32),
        grid=grid,
        in_specs=[
            pl.BlockSpec((tile_n, in_size), lambda i: (i, 0)),   # x tiles
            wspec((in_size, H1_PAD)), wspec((1, H1_PAD)),
            wspec((H1_PAD, H2_PAD)),  wspec((1, H2_PAD)),
            wspec((H2_PAD, OUT_PAD)), wspec((1, OUT_PAD)),
        ],
        out_specs=pl.BlockSpec((tile_n, OUT_PAD), lambda i: (i, 0)),
        compiler_params=pltpu.CompilerParams(
            dimension_semantics=("parallel",),
            vmem_limit_bytes=32 * 1024 * 1024,
        ),
        cost_estimate=pl.CostEstimate(
            flops=flops,
            transcendentals=transcendentals,
            bytes_accessed=bytes_accessed,
        ),
    )(xp, w1p, b1p, w2p, b2p, w3p, b3p)

    return out[:n, :out_size]


def init_params(key, in_size, out_size):
    """Deterministic init matching nn.Linear default: U(-1/sqrt(fan_in), +1/sqrt(fan_in))."""
    def linear(k, fan_in, fan_out):
        kw, kb = jax.random.split(k)
        bound = 1.0 / jnp.sqrt(fan_in)
        w = jax.random.uniform(kw, (fan_in, fan_out), jnp.float32, -bound, bound)
        b = jax.random.uniform(kb, (1, fan_out), jnp.float32, -bound, bound)
        return w, b

    k1, k2, k3 = jax.random.split(key, 3)
    w1, b1 = linear(k1, in_size, H1)
    w2, b2 = linear(k2, H1, H2)
    w3, b3 = linear(k3, H2, out_size)
    return w1, b1, w2, b2, w3, b3


def _ref_forward(x, w1, b1, w2, b2, w3, b3):
    h1 = jnp.maximum(x @ w1 + b1, 0.0)
    sig = jax.nn.sigmoid(h1 @ w2 + b2)
    logits = sig @ w3 + b3
    return jax.nn.softmax(logits, axis=-1)


if __name__ == "__main__":
    key = jax.random.PRNGKey(0)
    kx, kp = jax.random.split(key)

    N, IN_SIZE, OUT_SIZE = 8, 16, 4
    x = jax.random.normal(kx, (N, IN_SIZE), jnp.float32)
    params = init_params(kp, IN_SIZE, OUT_SIZE)

    y = neuralnet_forward(x, *params)
    jax.block_until_ready(y)

    y_ref = _ref_forward(x, *params)
    assert y.shape == (N, OUT_SIZE)
    assert jnp.allclose(y, y_ref, atol=1e-5, rtol=1e-5)
    assert jnp.allclose(jnp.sum(y, axis=-1), 1.0, atol=1e-5)

    print("KERNEL_OK")
</pallas_src>

<mosaic_0001>
module attributes {stable_mosaic.version = 11 : i64} {
  func.func @_mlp_kernel(%arg0: i32, %arg1: memref<8x16xf32, #tpu.memory_space<vmem>>, %arg2: memref<16x128xf32, #tpu.memory_space<vmem>>, %arg3: memref<1x128xf32, #tpu.memory_space<vmem>>, %arg4: memref<128x128xf32, #tpu.memory_space<vmem>>, %arg5: memref<1x128xf32, #tpu.memory_space<vmem>>, %arg6: memref<128x128xf32, #tpu.memory_space<vmem>>, %arg7: memref<1x128xf32, #tpu.memory_space<vmem>>, %arg8: memref<8x128xf32, #tpu.memory_space<vmem>>) attributes {dimension_semantics = [#tpu.dimension_semantics<parallel>], iteration_bounds = array<i64: 1>, scalar_prefetch = 0 : i64, scratch_operands = 0 : i64, tpu.core_type = #tpu.core_type<tc>, window_params = [{transform_indices = @transform_0, window_bounds = array<i64: 8, 16>}, {pipeline_mode = #tpu.pipeline_mode<synchronous>, transform_indices = @transform_1, window_bounds = array<i64: 16, 128>}, {pipeline_mode = #tpu.pipeline_mode<synchronous>, transform_indices = @transform_2, window_bounds = array<i64: 1, 128>}, {pipeline_mode = #tpu.pipeline_mode<synchronous>, transform_indices = @transform_3, window_bounds = array<i64: 128, 128>}, {pipeline_mode = #tpu.pipeline_mode<synchronous>, transform_indices = @transform_4, window_bounds = array<i64: 1, 128>}, {pipeline_mode = #tpu.pipeline_mode<synchronous>, transform_indices = @transform_5, window_bounds = array<i64: 128, 128>}, {pipeline_mode = #tpu.pipeline_mode<synchronous>, transform_indices = @transform_6, window_bounds = array<i64: 1, 128>}, {transform_indices = @transform_7, window_bounds = array<i64: 8, 128>}]} {
    %c0 = arith.constant 0 : index
    %c0_0 = arith.constant 0 : index
    %0 = vector.load %arg1[%c0, %c0_0] : memref<8x16xf32, #tpu.memory_space<vmem>>, vector<8x16xf32>
    %c0_1 = arith.constant 0 : index
    %c0_2 = arith.constant 0 : index
    %1 = vector.load %arg2[%c0_1, %c0_2] : memref<16x128xf32, #tpu.memory_space<vmem>>, vector<16x128xf32>
    %cst = arith.constant dense<0.000000e+00> : vector<8x128xf32>
    %2 = tpu.matmul %0, %1, %cst {dimension_numbers = #tpu.dot_dimension_numbers<[1], [0], [0], [1], [0, 0, 1, 1], [], []>} : vector<8x16xf32>, vector<16x128xf32>, vector<8x128xf32> -> vector<8x128xf32>
    %c0_3 = arith.constant 0 : index
    %c0_4 = arith.constant 0 : index
    %3 = vector.load %arg3[%c0_3, %c0_4] : memref<1x128xf32, #tpu.memory_space<vmem>>, vector<1x128xf32>
    %4 = vector.broadcast %3 : vector<1x128xf32> to vector<8x128xf32>
    %5 = arith.addf %2, %4 : vector<8x128xf32>
    %cst_5 = arith.constant 0.000000e+00 : f32
    %6 = vector.broadcast %cst_5 : f32 to vector<8x128xf32>
    %7 = arith.maximumf %5, %6 : vector<8x128xf32>
    %c0_6 = arith.constant 0 : index
    %c0_7 = arith.constant 0 : index
    %8 = vector.load %arg4[%c0_6, %c0_7] : memref<128x128xf32, #tpu.memory_space<vmem>>, vector<128x128xf32>
    %cst_8 = arith.constant dense<0.000000e+00> : vector<8x128xf32>
    %9 = tpu.matmul %7, %8, %cst_8 {dimension_numbers = #tpu.dot_dimension_numbers<[1], [0], [0], [1], [0, 0, 1, 1], [], []>} : vector<8x128xf32>, vector<128x128xf32>, vector<8x128xf32> -> vector<8x128xf32>
    %c0_9 = arith.constant 0 : index
    %c0_10 = arith.constant 0 : index
    %10 = vector.load %arg5[%c0_9, %c0_10] : memref<1x128xf32, #tpu.memory_space<vmem>>, vector<1x128xf32>
    %11 = vector.broadcast %10 : vector<1x128xf32> to vector<8x128xf32>
    %12 = arith.addf %9, %11 : vector<8x128xf32>
    %13 = arith.negf %12 : vector<8x128xf32>
    %14 = math.exp %13 : vector<8x128xf32>
    %cst_11 = arith.constant 1.000000e+00 : f32
    %15 = vector.broadcast %cst_11 : f32 to vector<8x128xf32>
    %16 = arith.addf %15, %14 : vector<8x128xf32>
    %17 = arith.divf %15, %16 : vector<8x128xf32>
    %c0_12 = arith.constant 0 : index
    %c0_13 = arith.constant 0 : index
    %18 = vector.load %arg6[%c0_12, %c0_13] : memref<128x128xf32, #tpu.memory_space<vmem>>, vector<128x128xf32>
    %cst_14 = arith.constant dense<0.000000e+00> : vector<8x128xf32>
    %19 = tpu.matmul %17, %18, %cst_14 {dimension_numbers = #tpu.dot_dimension_numbers<[1], [0], [0], [1], [0, 0, 1, 1], [], []>} : vector<8x128xf32>, vector<128x128xf32>, vector<8x128xf32> -> vector<8x128xf32>
    %c0_15 = arith.constant 0 : index
    %c0_16 = arith.constant 0 : index
    %20 = vector.load %arg7[%c0_15, %c0_16] : memref<1x128xf32, #tpu.memory_space<vmem>>, vector<1x128xf32>
    %21 = vector.broadcast %20 : vector<1x128xf32> to vector<8x128xf32>
    %22 = arith.addf %19, %21 : vector<8x128xf32>
    %23 = tpu.iota {dimensions = array<i32: 1>} : vector<8x128xi32>
    %c4_i32 = arith.constant 4 : i32
    %24 = vector.broadcast %c4_i32 : i32 to vector<8x128xi32>
    %25 = arith.cmpi slt, %23, %24 : vector<8x128xi32>
    %cst_17 = arith.constant 0xFF800000 : f32
    %26 = vector.broadcast %cst_17 : f32 to vector<8x128xf32>
    %27 = arith.select %25, %22, %26 : vector<8x128xi1>, vector<8x128xf32>
    %cst_18 = arith.constant dense<0xFF800000> : vector<8xf32>
    %28 = vector.multi_reduction <maximumf>, %27, %cst_18 [1] : vector<8x128xf32> to vector<8xf32>
    %29 = vector.shape_cast %28 : vector<8xf32> to vector<8x1xf32>
    %30 = vector.broadcast %29 : vector<8x1xf32> to vector<8x128xf32>
    %31 = arith.subf %27, %30 : vector<8x128xf32>
    %32 = math.exp %31 : vector<8x128xf32>
    %cst_19 = arith.constant dense<0.000000e+00> : vector<8xf32>
    %33 = vector.multi_reduction <add>, %32, %cst_19 [1] : vector<8x128xf32> to vector<8xf32>
    %34 = vector.shape_cast %33 : vector<8xf32> to vector<8x1xf32>
    %35 = vector.broadcast %34 : vector<8x1xf32> to vector<8x128xf32>
    %36 = arith.divf %32, %35 : vector<8x128xf32>
    %c0_20 = arith.constant 0 : index
    %c0_21 = arith.constant 0 : index
    %37 = vector.load %arg8[%c0_20, %c0_21] : memref<8x128xf32, #tpu.memory_space<vmem>>, vector<8x128xf32>
    tpu.vector_store %arg8[%c0_20, %c0_21], %36 {strides = array<i32>} : memref<8x128xf32, #tpu.memory_space<vmem>>, vector<8x128xf32>,
    return
  }
  func.func @transform_0(%arg0: i32) -> (i32, i32) {
    %c0_i32 = arith.constant 0 : i32
    %c0_i32_0 = arith.constant 0 : i32
    return %arg0, %c0_i32 : i32, i32
  }
  func.func @transform_1(%arg0: i32) -> (i32, i32) {
    %c0_i32 = arith.constant 0 : i32
    %c0_i32_0 = arith.constant 0 : i32
    %c0_i32_1 = arith.constant 0 : i32
    return %c0_i32, %c0_i32_0 : i32, i32
  }
  func.func @transform_2(%arg0: i32) -> (i32, i32) {
    %c0_i32 = arith.constant 0 : i32
    %c0_i32_0 = arith.constant 0 : i32
    %c0_i32_1 = arith.constant 0 : i32
    return %c0_i32, %c0_i32_0 : i32, i32
  }
  func.func @transform_3(%arg0: i32) -> (i32, i32) {
    %c0_i32 = arith.constant 0 : i32
    %c0_i32_0 = arith.constant 0 : i32
    %c0_i32_1 = arith.constant 0 : i32
    return %c0_i32, %c0_i32_0 : i32, i32
  }
  func.func @transform_4(%arg0: i32) -> (i32, i32) {
    %c0_i32 = arith.constant 0 : i32
    %c0_i32_0 = arith.constant 0 : i32
    %c0_i32_1 = arith.constant 0 : i32
    return %c0_i32, %c0_i32_0 : i32, i32
  }
  func.func @transform_5(%arg0: i32) -> (i32, i32) {
    %c0_i32 = arith.constant 0 : i32
    %c0_i32_0 = arith.constant 0 : i32
    %c0_i32_1 = arith.constant 0 : i32
    return %c0_i32, %c0_i32_0 : i32, i32
  }
  func.func @transform_6(%arg0: i32) -> (i32, i32) {
    %c0_i32 = arith.constant 0 : i32
    %c0_i32_0 = arith.constant 0 : i32
    %c0_i32_1 = arith.constant 0 : i32
    return %c0_i32, %c0_i32_0 : i32, i32
  }
  func.func @transform_7(%arg0: i32) -> (i32, i32) {
    %c0_i32 = arith.constant 0 : i32
    %c0_i32_0 = arith.constant 0 : i32
    return %arg0, %c0_i32 : i32, i32
  }
}

</mosaic_0001>

<bundles_post_ra>
// kernel: tpu_custom_call.1
= control target key start
LH: loop header
LB: loop body
LE: loop exit
PB: predicated region body
PF: predicated region fallthrough
CT: control target
= control target key end

     0   :  { %12 = vsyncpa [#allocation3], 0  ;;  %s842_s0 = inlined_call_operand.hbm [shape: f32[8,16], index: 0, kind: input, shape index: {}]   ;;  %s843_s1 = inlined_call_operand.hbm [shape: f32[16,128], index: 1, kind: input, shape index: {}]   ;;  %s844_s2 = inlined_call_operand.vmem [shape: f32[1,128], index: 2, kind: input, shape index: {}]   ;;  %s845_s3 = inlined_call_operand.hbm [shape: f32[128,128], index: 3, kind: input, shape index: {}]   ;;  %s846_s4 = inlined_call_operand.vmem [shape: f32[1,128], index: 4, kind: input, shape index: {}]   ;;  %s847_s5 = inlined_call_operand.hbm [shape: f32[128,128], index: 5, kind: input, shape index: {}]   ;;  %s848_s6 = inlined_call_operand.vmem [shape: f32[1,128], index: 6, kind: input, shape index: {}]   ;;  %s849_s7 = inlined_call_operand.hbm [shape: f32[8,128], index: 7, kind: output, shape index: {}]  }
   0x1   :  { %13 = vsyncpa [#allocation6], 0 }
   0x2   :  { %14 = vsyncpa [#allocation9], 0 }
   0x3   :  { %15 = vsyncpa [#allocation4], 0  ;;  %s694_s24 = smov [#allocation5]   ;;  %s576_s28 = scalar_lea.hbm %s843_s1, 256 }
   0x4   :  { %s31_s25 = sshll.u32 %s694_s24, 4  ;;  %p577_p0 = scmp.ne.s32.totalorder %s843_s1, %s576_s28  ;;  %s32_s25 = int_to_ptr.vmem [resolvable:$true] %s31_s25 }
   0x5   :  { %p580_p1 = scmp.lt.u32.totalorder %s576_s28, %s843_s1 }
   0x7   :  { %p582_p2 = pnand %p580_p1, %p577_p0 }
   0x9   :  { %585 = shalt.err (!%p582_p2)
}
   0xa   :  { %s586_s10 = scalar_lea.vmem %s32_s25, 256  ;;  %p591_p4 = scmp.lt.s32.totalorder %s32_s25, %s32_s25 }
   0xb   :  { %p587_p3 = scmp.ne.s32.totalorder %s32_s25, %s586_s10  ;;  %p592_p5 = scmp.lt.s32.totalorder %s586_s10, %s586_s10 }
   0xd   :  { %p593_p6 = por %p592_p5, %p591_p4 }
   0xf   :  { %p594_p7 = pnand %p593_p6, %p587_p3 }
  0x11   :  { %597 = shalt.err (!%p594_p7)
}
  0x12   :  { %s695_s11 = smov 128   ;;  %s696_s12 = smov 8  }
  0x13   :  { %37 = dma.hbm_to_vmem [thread:$0]  %s843_s1, 256, %s32_s25, [#allocation6], %s695_s11, %s695_s11, %s696_s12  }
  0x14   :  { %s697_s15 = smov [#allocation2]   ;;  %s698_s17 = smov [#allocation7]  }
  0x15   :  { %s22_s16 = sshll.u32 %s697_s15, 4  ;;  %s45_s18 = sshll.u32 %s698_s17, 4  ;;  %s23_s16 = int_to_ptr.vmem [resolvable:$true] %s22_s16  ;;  %s46_s18 = int_to_ptr.vmem [resolvable:$true] %s45_s18 }
  0x16   :  { %s598_s21 = scalar_lea.hbm %s842_s0, 128 }
  0x17   :  { %p599_p8 = scmp.ne.s32.totalorder %s842_s0, %s598_s21  ;;  %p602_p9 = scmp.lt.u32.totalorder %s598_s21, %s842_s0 }
  0x19   :  { %p604_p10 = pnand %p602_p9, %p599_p8 }
  0x1b   :  { %607 = shalt.err (!%p604_p10)
}
  0x1c   :  { %s608_s1 = scalar_lea.vmem %s23_s16, 128  ;;  %p613_p12 = scmp.lt.s32.totalorder %s23_s16, %s23_s16 }
  0x1d   :  { %p609_p11 = scmp.ne.s32.totalorder %s23_s16, %s608_s1  ;;  %p614_p13 = scmp.lt.s32.totalorder %s608_s1, %s608_s1 }
  0x1f   :  { %p615_p0 = por %p614_p13, %p613_p12 }
  0x21   :  { %p616_p1 = pnand %p615_p0, %p609_p11 }
  0x23   :  { %619 = shalt.err (!%p616_p1)
}
  0x24   :  { %25 = dma.hbm_to_vmem [thread:$0]  %s842_s0, 128, %s23_s16, [#allocation3]  }
  0x25   :  { %s620_s30 = scalar_lea.hbm %s845_s3, 2048 }
  0x26   :  { %p621_p2 = scmp.ne.s32.totalorder %s845_s3, %s620_s30  ;;  %p624_p3 = scmp.lt.u32.totalorder %s620_s30, %s845_s3 }
  0x28   :  { %p626_p4 = pnand %p624_p3, %p621_p2 }
  0x2a   :  { %629 = shalt.err (!%p626_p4)
}
  0x2b   :  { %s630_s14 = scalar_lea.vmem %s46_s18, 2048  ;;  %p635_p6 = scmp.lt.s32.totalorder %s46_s18, %s46_s18 }
  0x2c   :  { %p631_p5 = scmp.ne.s32.totalorder %s46_s18, %s630_s14  ;;  %p636_p7 = scmp.lt.s32.totalorder %s630_s14, %s630_s14 }
  0x2e   :  { %p637_p8 = por %p636_p7, %p635_p6 }
  0x30   :  { %p638_p9 = pnand %p637_p8, %p631_p5 }
  0x32   :  { %641 = shalt.err (!%p638_p9)
}
  0x33   :  { %51 = dma.hbm_to_vmem [thread:$0]  %s845_s3, 2048, %s46_s18, [#allocation6], %s695_s11, %s695_s11, %s696_s12  }
  0x34   :  { %s699_s16 = smov [#allocation8]   ;;  %s642_s21 = scalar_lea.hbm %s847_s5, 2048 }
  0x35   :  { %s59_s17 = sshll.u32 %s699_s16, 4  ;;  %p643_p10 = scmp.ne.s32.totalorder %s847_s5, %s642_s21  ;;  %s60_s17 = int_to_ptr.vmem [resolvable:$true] %s59_s17 }
  0x36   :  { %p646_p11 = scmp.lt.u32.totalorder %s642_s21, %s847_s5 }
  0x38   :  { %p648_p12 = pnand %p646_p11, %p643_p10 }
  0x3a   :  { %651 = shalt.err (!%p648_p12)
}
  0x3b   :  { %s652_s1 = scalar_lea.vmem %s60_s17, 2048  ;;  %p657_p0 = scmp.lt.s32.totalorder %s60_s17, %s60_s17 }
  0x3c   :  { %p653_p13 = scmp.ne.s32.totalorder %s60_s17, %s652_s1  ;;  %p658_p1 = scmp.lt.s32.totalorder %s652_s1, %s652_s1 }
  0x3e   :  { %p659_p2 = por %p658_p1, %p657_p0 }
  0x40   :  { %p660_p3 = pnand %p659_p2, %p653_p13 }
  0x42   :  { %663 = shalt.err (!%p660_p3)
}
  0x43   :  { %65 = dma.hbm_to_vmem [thread:$0]  %s847_s5, 2048, %s60_s17, [#allocation9], %s695_s11, %s695_s11, %s696_s12  }
  0x44   :  { %686 = dma.done.wait [#allocation3], 128  }
  0x45   :  { %687 = vsyncadd [#allocation3], 4294967168 }
  0x46   :  { %688 = dma.done.wait [#allocation6], 2304  }
  0x47   :  { %689 = vsyncadd [#allocation6], 4294964992 }
  0x48   :  { %690 = dma.done.wait [#allocation9], 2048  }
  0x49   :  { %691 = vsyncadd [#allocation9], 4294965248  ;;  %v700_v0 = vmov 0.0|0.0   ;;  %vm701_vm0 = vmmov 0   ;;  %v702_v1 = vmov 0.0   ;;  %v81_v2 = vld [vmem:[#allocation5] sm:$0xff] }
  0x4a   :  { %507 = vmatprep.subr.bf16.mxu0 %v700_v0  ;;  %434 = vmatprep.mubr.msk.f32.mxu0 %vm701_vm0, %v702_v1  ;;  %v82_v3 = vld [vmem:[#allocation5 + $0x8] sm:$0xff]  ;;  %v165_v5 = vld [vmem:[#allocation7] sm:$0xff]  ;;  %v166_v6 = vld [vmem:[#allocation7 + $0x8] sm:$0xff]  ;;  %vm90_vm1 = vcmask 130048  }
  0x4b   :  { %510 = vmatprep.subr.bf16.mxu1 %v700_v0  ;;  %469 = vmatprep.mubr.msk.f32.mxu1 %vm701_vm0, %v702_v1  ;;  %v508_v4 = vpack.c.bf16 %v82_v3, %v81_v2  ;;  %v167_v7 = vld [vmem:[#allocation7 + $0x10] sm:$0xff]  ;;  %v511_v8 = vpack.c.bf16 %v166_v6, %v165_v5  ;;  %v168_v9 = vld [vmem:[#allocation7 + $0x18] sm:$0xff]  ;;  %v80_v10 = vld [vmem:[#allocation2] sm:$0xff] }
  0x4c   :  { %v514_v11 = vpack.c.bf16 %v168_v9, %v167_v7  ;;  %v169_v12 = vld [vmem:[#allocation7 + $0x20] sm:$0xff]  ;;  %v170_v13 = vld [vmem:[#allocation7 + $0x28] sm:$0xff]  ;;  %v171_v15 = vld [vmem:[#allocation7 + $0x30] sm:$0xff] }
  0x4d   :  { %509 = vmatpush3.bf16.msra.mxu0 %v508_v4  ;;  %512 = vmatpush3.bf16.msra.mxu1 %v511_v8  ;;  %v517_v14 = vpack.c.bf16 %v170_v13, %v169_v12  ;;  %v172_v16 = vld [vmem:[#allocation7 + $0x38] sm:$0xff]  ;;  %v173_v18 = vld [vmem:[#allocation7 + $0x40] sm:$0xff]  ;;  %v174_v19 = vld [vmem:[#allocation7 + $0x48] sm:$0xff]  ;;  %v357_v4 = vlaneseq }
  0x4e   :  { %534 = vmatprep.subr.bf16.mxu0 %v700_v0  ;;  %513 = vmatprep.subr.bf16.mxu1 %v700_v0  ;;  %v520_v17 = vpack.c.bf16 %v172_v16, %v171_v15  ;;  %v523_v20 = vpack.c.bf16 %v174_v19, %v173_v18  ;;  %v175_v21 = vld [vmem:[#allocation7 + $0x50] sm:$0xff]  ;;  %v176_v22 = vld [vmem:[#allocation7 + $0x58] sm:$0xff]  ;;  %v177_v24 = vld [vmem:[#allocation7 + $0x60] sm:$0xff] }
  0x4f   :  { %v526_v23 = vpack.c.bf16 %v176_v22, %v175_v21  ;;  %v178_v25 = vld [vmem:[#allocation7 + $0x68] sm:$0xff]  ;;  %v179_v27 = vld [vmem:[#allocation7 + $0x70] sm:$0xff]  ;;  %v180_v28 = vld [vmem:[#allocation7 + $0x78] sm:$0xff]  ;;  %v358_v5 = vand.u32 127, %v357_v4 }
  0x50   :  { %435 = vmatmul.mubr.msk.f32.vlgmr.msra.gmra.mrb[0].mxu0 %vm90_vm1, %v80_v10  ;;  %v529_v26 = vpack.c.bf16 %v178_v25, %v177_v24  ;;  %v532_v29 = vpack.c.bf16 %v180_v28, %v179_v27  ;;  %v264_v30 = vld [vmem:[#allocation8] sm:$0xff]  ;;  %v265_v31 = vld [vmem:[#allocation8 + $0x8] sm:$0xff]  ;;  %v266_v38 = vld [vmem:[#allocation8 + $0x10] sm:$0xff] }
  0x51   :  { %504 = vmatprep.mubr.msk.f32.mxu0 %vm701_vm0, %v702_v1  ;;  %515 = vmatpush3.bf16.msra.mxu1 %v514_v11  ;;  %v535_v32 = vpack.c.bf16 %v265_v31, %v264_v30  ;;  %v388_v33 = vld [vmem:[%s844_s2] ss:$0 sm:$0xff]  ;;  %v267_v39 = vld [vmem:[#allocation8 + $0x18] sm:$0xff]  ;;  %v268_v41 = vld [vmem:[#allocation8 + $0x20] sm:$0xff]  ;;  %vm359_vm2 = vcmp.lt.s32.totalorder %v358_v5, 4 }
  0x52   :  { %516 = vmatprep.subr.bf16.mxu1 %v700_v0  ;;  %v538_v40 = vpack.c.bf16 %v267_v39, %v266_v38  ;;  %v269_v42 = vld [vmem:[#allocation8 + $0x28] sm:$0xff]  ;;  %v270_v44 = vld [vmem:[#allocation8 + $0x30] sm:$0xff]  ;;  %v271_v45 = vld [vmem:[#allocation8 + $0x38] sm:$0xff] }
  0x53   :  { %536 = vmatpush3.bf16.msra.mxu0 %v535_v32  ;;  %v541_v43 = vpack.c.bf16 %v269_v42, %v268_v41  ;;  %v544_v46 = vpack.c.bf16 %v271_v45, %v270_v44  ;;  %v272_v47 = vld [vmem:[#allocation8 + $0x40] sm:$0xff]  ;;  %v273_v48 = vld [vmem:[#allocation8 + $0x48] sm:$0xff]  ;;  %v274_v50 = vld [vmem:[#allocation8 + $0x50] sm:$0xff] }
  0x54   :  { %537 = vmatprep.subr.bf16.mxu0 %v700_v0  ;;  %v547_v49 = vpack.c.bf16 %v273_v48, %v272_v47  ;;  %v275_v51 = vld [vmem:[#allocation8 + $0x58] sm:$0xff]  ;;  %v276_v53 = vld [vmem:[#allocation8 + $0x60] sm:$0xff]  ;;  %v277_v54 = vld [vmem:[#allocation8 + $0x68] sm:$0xff] }
  0x55   :  { %518 = vmatpush3.bf16.msra.mxu1 %v517_v14  ;;  %v550_v52 = vpack.c.bf16 %v275_v51, %v274_v50  ;;  %v553_v55 = vpack.c.bf16 %v277_v54, %v276_v53  ;;  %v278_v56 = vld [vmem:[#allocation8 + $0x70] sm:$0xff]  ;;  %v279_v57 = vld [vmem:[#allocation8 + $0x78] sm:$0xff]  ;;  %v390_v59 = vld [vmem:[%s846_s4] ss:$0 sm:$0xff]  ;;  %s703_s4 = smov [#allocation10]  }
  0x56   :  { %519 = vmatprep.subr.bf16.mxu1 %v700_v0  ;;  %v556_v58 = vpack.c.bf16 %v279_v57, %v278_v56  ;;  %s377_s28 = sshll.u32 %s703_s4, 4  ;;  %s378_s28 = int_to_ptr.vmem [resolvable:$true] %s377_s28 }
  0x57   :  { %539 = vmatpush3.bf16.msra.mxu0 %v538_v40  ;;  %p669_p5 = scmp.lt.s32.totalorder %s378_s28, %s378_s28 }
  0x58   :  { %540 = vmatprep.subr.bf16.mxu0 %v700_v0 }
  0x59   :  { %521 = vmatpush3.bf16.msra.mxu1 %v520_v17 }
  0x5a   :  { %522 = vmatprep.subr.bf16.mxu1 %v700_v0 }
  0x5b   :  { %542 = vmatpush3.bf16.msra.mxu0 %v541_v43 }
  0x5c   :  { %543 = vmatprep.subr.bf16.mxu0 %v700_v0 }
  0x5d   :  { %524 = vmatpush3.bf16.msra.mxu1 %v523_v20 }
  0x5e   :  { %525 = vmatprep.subr.bf16.mxu1 %v700_v0 }
  0x5f   :  { %545 = vmatpush3.bf16.msra.mxu0 %v544_v46 }
  0x60   :  { %546 = vmatprep.subr.bf16.mxu0 %v700_v0 }
  0x61   :  { %527 = vmatpush3.bf16.msra.mxu1 %v526_v23 }
  0x62   :  { %528 = vmatprep.subr.bf16.mxu1 %v700_v0 }
  0x63   :  { %548 = vmatpush3.bf16.msra.mxu0 %v547_v49 }
  0x64   :  { %549 = vmatprep.subr.bf16.mxu0 %v700_v0 }
  0x65   :  { %530 = vmatpush3.bf16.msra.mxu1 %v529_v26 }
  0x66   :  { %531 = vmatprep.subr.bf16.mxu1 %v700_v0 }
  0x67   :  { %551 = vmatpush3.bf16.msra.mxu0 %v550_v52 }
  0x68   :  { %552 = vmatprep.subr.bf16.mxu0 %v700_v0 }
  0x69   :  { %533 = vmatpush3.bf16.msra.mxu1 %v532_v29 }
  0x6b   :  { %554 = vmatpush3.bf16.msra.mxu0 %v553_v55 }
  0x6c   :  { %555 = vmatprep.subr.bf16.mxu0 %v700_v0  ;;  %v392_v0 = vld [vmem:[%s848_s6] ss:$0 sm:$0xff]  ;;  %s664_s6 = scalar_lea.vmem %s378_s28, 128 }
  0x6d   :  { %p665_p4 = scmp.ne.s32.totalorder %s378_s28, %s664_s6  ;;  %p670_p6 = scmp.lt.s32.totalorder %s664_s6, %s664_s6 }
  0x6f   :  { %557 = vmatpush3.bf16.msra.mxu0 %v556_v58  ;;  %p671_p7 = por %p670_p6, %p669_p5 }
  0x71   :  { %p672_p8 = pnand %p671_p7, %p665_p4 }
 0x123   :  { %v160_v34 = vpop.f32.mrb[0].mxu0 }
 0x124   :  { %v161_v35 = vadd.f32 %v388_v33, %v160_v34  ;;  %v436_v36 = vpop.f32.mrb[1].mxu0 }
 0x126   :  { %v164_v37 = vmax.f32 %v161_v35, 0.0 }
 0x128   :  { %470 = vmatmul.mubr.f32.vlgmr.msra.gmra.mrb[0].mxu1 %v164_v37 }
 0x1fb   :  { %v254_v60 = vpop.f32.mrb[0].mxu1 }
 0x1fc   :  { %v255_v61 = vadd.f32 %v390_v59, %v254_v60  ;;  %v471_v62 = vpop.f32.mrb[1].mxu1 }
 0x1fe   :  { %v391_v63 = vmul.f32 -1.442695, %v255_v61 }
 0x200   :  { %568 = vpow2.f32 %v391_v63 }
 0x20a   :  { %v569_v1 = vpop.eup %568 }
 0x20b   :  { %v261_v2 = vadd.f32 1.0, %v569_v1 }
 0x20d   :  { %570 = vrcp.f32 %v261_v2 }
 0x217   :  { %v571_v3 = vpop.eup %570 }
 0x218   :  { %505 = vmatmul.mubr.f32.vlgmr.msra.gmra.mrb[2].mxu0 %v571_v3 }
 0x2eb   :  { %v353_v6 = vpop.f32.mrb[2].mxu0 }
 0x2ec   :  { %v354_v7 = vadd.f32 %v392_v0, %v353_v6  ;;  %v506_v8 = vpop.f32.mrb[3].mxu0 }
 0x2ee   :  { %v360_v9 = vsel %vm359_vm2, %v354_v7, -inf }
 0x2ef   :  { %361 = vmax.xlane.f32.xlu0 %v360_v9 }
 0x37c   :  { %v362_v10 = vpop.xlane.xlu0 %361 }
 0x37d   :  { %v363_v11 = vsub.f32 %v360_v9, %v362_v10 }
 0x37f   :  { %v364_v12 = vmul.f32 1.442695, %v363_v11 }
 0x381   :  { %572 = vpow2.f32 %v364_v12 }
 0x38b   :  { %v573_v13 = vpop.eup %572 }
 0x38c   :  { %366 = vadd.xlane.f32.xlu0 %v573_v13 }
 0x419   :  { %v367_v14 = vpop.xlane.xlu0 %366 }
 0x41a   :  { %574 = vrcp.f32 %v367_v14 }
 0x424   :  { %v575_v15 = vpop.eup %574 }
 0x425   :  { %v369_v16 = vmul.f32 %v575_v15, %v573_v13 }
 0x427   :  { %370 = vst [vmem:[#allocation10] sm:$0xff] %v369_v16 }
 0x428   :  { %675 = shalt.err (!%p672_p8)
}
 0x429   :  { %s676_s8 = scalar_lea.hbm %s849_s7, 128 }
 0x42a   :  { %p677_p9 = scmp.ne.s32.totalorder %s849_s7, %s676_s8  ;;  %p680_p10 = scmp.lt.u32.totalorder %s676_s8, %s849_s7 }
 0x42c   :  { %p682_p11 = pnand %p680_p10, %p677_p9 }
 0x42e   :  { %685 = shalt.err (!%p682_p11)
}
 0x42f   :  { %380 = dma.vmem_to_hbm [thread:$0]  %s378_s28, 128, %s849_s7, [#allocation4]  }
 0x430   :  { %692 = dma.done.wait [#allocation4], 128  }
 0x431   :  { %693 = vsyncadd [#allocation4], 4294967168 }
 0x432   :  { %384 = vsyncpa [#allocation3], 1 }
 0x433   :  { %385 = vsyncpa [#allocation6], 1 }
 0x434   :  { %386 = vsyncpa [#allocation9], 1 }
 0x435   :  { %387 = vsyncpa [#allocation4], 1 }

</bundles_post_ra>
